<compile_context>
chip_gen: v7x
topology: tpu7x:2x2x1
jax: 0.10.0
libtpu: 0.0.40
codegen_flags: <defaults>
</compile_context>

<pallas_src>
import math

import jax
import jax.numpy as jnp
from jax.experimental import pallas as pl
from jax.experimental.pallas import tpu as pltpu


_VMEM_BUDGET_BYTES = 20 * 1024 * 1024   # conservative resident budget (fits v5e/v6e/v7x)
_VMEM_LIMIT_BYTES = 32 * 1024 * 1024    # scoped-VMEM limit; >= default on every generation
_MAX_TILE = 1024                        # rows of flattened indices per grid step


def _embed_kernel(idx_ref, table_ref, out_ref):
    # idx_ref:   (tile, 1)        int32  (VMEM)
    # table_ref: (c_in, d_model)  f32    (VMEM, full sinusoidal table)
    # out_ref:   (tile, d_model)  f32
    tile = idx_ref.shape[0]
    c_in = table_ref.shape[0]
    idx = idx_ref[...]                                            # (tile, 1)
    iota = jax.lax.broadcasted_iota(jnp.int32, (tile, c_in), 1)   # (tile, c_in)
    onehot = (iota == idx).astype(jnp.float32)                    # gather as one-hot
    # HIGHEST precision: selected table rows come through at full f32 accuracy
    # (no bf16 truncation on the MXU), i.e. an exact embedding lookup.
    out_ref[...] = jnp.dot(onehot, table_ref[...],
                           preferred_element_type=jnp.float32,
                           precision=jax.lax.Precision.HIGHEST)


def make_fixed_embedding_table(c_in, d_model):
    """Deterministic sinusoidal table, identical to the PyTorch __init__."""
    position = jnp.arange(c_in, dtype=jnp.float32)[:, None]            # (c_in, 1)
    div_term = jnp.exp(jnp.arange(0, d_model, 2, dtype=jnp.float32)
                       * -(math.log(10000.0) / d_model))               # (d_model//2,)
    w = jnp.zeros((c_in, d_model), dtype=jnp.float32)
    w = w.at[:, 0::2].set(jnp.sin(position * div_term))
    w = w.at[:, 1::2].set(jnp.cos(position * div_term))
    return w


def _round_up8(n):
    return ((n + 7) // 8) * 8


def _choose_tile(N, c_in, d_model):
    """Largest multiple-of-8 index tile that fits the VMEM budget, while keeping
    at least ~4 grid steps so the parallel axis can shard across v7x's 2 TCs."""
    def vmem_usage(t):
        out_db = 2 * t * d_model * 4       # double-buffered output block
        idx_db = 2 * t * 1 * 4             # double-buffered index block
        table = 2 * c_in * d_model * 4     # table block (worst case: double-buffered)
        onehot = t * c_in * 4              # live one-hot operand
        acc = t * d_model * 4              # matmul result before the store
        return out_db + idx_db + table + onehot + acc

    tile = _MAX_TILE
    while tile > 8 and vmem_usage(tile) > _VMEM_BUDGET_BYTES:
        tile -= 8
    # Keep several grid steps alive when the problem is big enough (megacore).
    tile = min(tile, max(8, _round_up8(pl.cdiv(N, 4))))
    # TODO(synk): for vocabularies too large for VMEM (c_in * d_model * 4 near the
    # budget), switch to a scalar-prefetch DMA row gather instead of one-hot matmul.
    return max(8, tile)


def _build_embed_call(N, c_in, d_model, tile, single_buffer_table):
    grid = (pl.cdiv(N, tile),)
    if single_buffer_table:
        # The table's index_map is constant (0, 0); single-buffer it so a large
        # vocabulary does not pay 2x its footprint in VMEM.
        table_spec = pl.BlockSpec((c_in, d_model), lambda i: (0, 0),
                                  pipeline_mode=pl.Buffered(1))
    else:
        table_spec = pl.BlockSpec((c_in, d_model), lambda i: (0, 0))

    return pl.pallas_call(
        _embed_kernel,
        out_shape=jax.ShapeDtypeStruct((N, d_model), jnp.float32),
        grid_spec=pltpu.PrefetchScalarGridSpec(
            num_scalar_prefetch=0,
            grid=grid,
            in_specs=[
                pl.BlockSpec((tile, 1), lambda i: (i, 0)),   # index tile
                table_spec,                                  # full table, resident
            ],
            out_specs=pl.BlockSpec((tile, d_model), lambda i: (i, 0)),
        ),
        compiler_params=pltpu.CompilerParams(
            dimension_semantics=("parallel",),
            vmem_limit_bytes=_VMEM_LIMIT_BYTES),
        cost_estimate=pl.CostEstimate(
            flops=2 * N * c_in * d_model,
            transcendentals=0,
            bytes_accessed=4 * (N * d_model + N + c_in * d_model)),
    )


def fixed_embedding(x, table, tile=None):
    """Forward pass of FixedEmbedding: table lookup at integer indices x (B, S)."""
    B, S = x.shape
    c_in, d_model = table.shape
    N = B * S
    if tile is None:
        tile = _choose_tile(N, c_in, d_model)
    assert tile % 8 == 0, "tile must be a multiple of 8 (sublane constraint)"

    idx = x.reshape(N, 1).astype(jnp.int32)

    try:
        out = _build_embed_call(N, c_in, d_model, tile,
                                single_buffer_table=True)(idx, table)
    except Exception:
        # pl.Buffered(1) single-buffering unsupported on this jax version; fall
        # back to the default (double-buffered, still copied only once since the
        # block index never changes) table block.
        out = _build_embed_call(N, c_in, d_model, tile,
                                single_buffer_table=False)(idx, table)

    return out.reshape(B, S, d_model)


if __name__ == "__main__":
    c_in, d_model = 16, 32          # embedding vocabulary / hidden size
    B, S = 2, 8                     # batch, sequence of indices

    key = jax.random.PRNGKey(0)
    x = jax.random.randint(key, (B, S), 0, c_in, dtype=jnp.int32)

    table = make_fixed_embedding_table(c_in, d_model)

    out = fixed_embedding(x, table)
    out = jax.block_until_ready(out)

    # reference check against plain JAX gather
    ref = jnp.take(table, x.reshape(-1), axis=0).reshape(B, S, d_model)
    assert out.shape == (B, S, d_model)
    assert out.dtype == jnp.float32
    assert jnp.allclose(out, ref, atol=1e-6), "mismatch vs reference embedding lookup"

    print("KERNEL_OK")
</pallas_src>

<mosaic_0001>
module attributes {stable_mosaic.version = 11 : i64} {
  func.func @_embed_kernel(%arg0: i32, %arg1: memref<8x1xi32, #tpu.memory_space<vmem>>, %arg2: memref<16x32xf32, #tpu.memory_space<vmem>>, %arg3: memref<8x32xf32, #tpu.memory_space<vmem>>) attributes {dimension_semantics = [#tpu.dimension_semantics<parallel>], iteration_bounds = array<i64: 2>, scalar_prefetch = 0 : i64, scratch_operands = 0 : i64, tpu.core_type = #tpu.core_type<tc>, window_params = [{transform_indices = @transform_0, window_bounds = array<i64: 8, 1>}, {pipeline_mode = #tpu.pipeline_mode<synchronous>, transform_indices = @transform_1, window_bounds = array<i64: 16, 32>}, {transform_indices = @transform_2, window_bounds = array<i64: 8, 32>}]} {
    %c0 = arith.constant 0 : index
    %c0_0 = arith.constant 0 : index
    %0 = vector.load %arg1[%c0, %c0_0] : memref<8x1xi32, #tpu.memory_space<vmem>>, vector<8x1xi32>
    %1 = tpu.iota {dimensions = array<i32: 1>} : vector<8x16xi32>
    %2 = vector.broadcast %0 : vector<8x1xi32> to vector<8x16xi32>
    %3 = arith.cmpi eq, %1, %2 : vector<8x16xi32>
    %4 = arith.extui %3 : vector<8x16xi1> to vector<8x16xi32>
    %5 = arith.sitofp %4 : vector<8x16xi32> to vector<8x16xf32>
    %c0_1 = arith.constant 0 : index
    %c0_2 = arith.constant 0 : index
    %6 = vector.load %arg2[%c0_1, %c0_2] : memref<16x32xf32, #tpu.memory_space<vmem>>, vector<16x32xf32>
    %cst = arith.constant dense<0.000000e+00> : vector<8x32xf32>
    %7 = tpu.matmul %5, %6, %cst {dimension_numbers = #tpu.dot_dimension_numbers<[1], [0], [0], [1], [0, 0, 1, 1], [], []>, precision = #tpu.contract_precision<fp32>} : vector<8x16xf32>, vector<16x32xf32>, vector<8x32xf32> -> vector<8x32xf32>
    %c0_3 = arith.constant 0 : index
    %c0_4 = arith.constant 0 : index
    %8 = vector.load %arg3[%c0_3, %c0_4] : memref<8x32xf32, #tpu.memory_space<vmem>>, vector<8x32xf32>
    tpu.vector_store %arg3[%c0_3, %c0_4], %7 {strides = array<i32>} : memref<8x32xf32, #tpu.memory_space<vmem>>, vector<8x32xf32>,
    return
  }
  func.func @transform_0(%arg0: i32) -> (i32, i32) {
    %c0_i32 = arith.constant 0 : i32
    %c0_i32_0 = arith.constant 0 : i32
    return %arg0, %c0_i32 : i32, i32
  }
  func.func @transform_1(%arg0: i32) -> (i32, i32) {
    %c0_i32 = arith.constant 0 : i32
    %c0_i32_0 = arith.constant 0 : i32
    %c0_i32_1 = arith.constant 0 : i32
    return %c0_i32, %c0_i32_0 : i32, i32
  }
  func.func @transform_2(%arg0: i32) -> (i32, i32) {
    %c0_i32 = arith.constant 0 : i32
    %c0_i32_0 = arith.constant 0 : i32
    return %arg0, %c0_i32 : i32, i32
  }
}

module attributes {stable_mosaic.version = 11 : i64} {
  func.func @_embed_kernel(%arg0: i32, %arg1: memref<8x1xi32, #tpu.memory_space<vmem>>, %arg2: memref<16x32xf32, #tpu.memory_space<vmem>>, %arg3: memref<8x32xf32, #tpu.memory_space<vmem>>) attributes {dimension_semantics = [#tpu.dimension_semantics<parallel>], iteration_bounds = array<i64: 2>, scalar_prefetch = 0 : i64, scratch_operands = 0 : i64, tpu.core_type = #tpu.core_type<tc>, window_params = [{transform_indices = @transform_0, window_bounds = array<i64: 8, 1>}, {pipeline_mode = #tpu.pipeline_mode<synchronous>, transform_indices = @transform_1, window_bounds = array<i64: 16, 32>}, {transform_indices = @transform_2, window_bounds = array<i64: 8, 32>}]} {
    %c0 = arith.constant 0 : index
    %c0_0 = arith.constant 0 : index
    %0 = vector.load %arg1[%c0, %c0_0] : memref<8x1xi32, #tpu.memory_space<vmem>>, vector<8x1xi32>
    %1 = tpu.iota {dimensions = array<i32: 1>} : vector<8x16xi32>
    %2 = vector.broadcast %0 : vector<8x1xi32> to vector<8x16xi32>
    %3 = arith.cmpi eq, %1, %2 : vector<8x16xi32>
    %4 = arith.extui %3 : vector<8x16xi1> to vector<8x16xi32>
    %5 = arith.sitofp %4 : vector<8x16xi32> to vector<8x16xf32>
    %c0_1 = arith.constant 0 : index
    %c0_2 = arith.constant 0 : index
    %6 = vector.load %arg2[%c0_1, %c0_2] : memref<16x32xf32, #tpu.memory_space<vmem>>, vector<16x32xf32>
    %cst = arith.constant dense<0.000000e+00> : vector<8x32xf32>
    %7 = tpu.matmul %5, %6, %cst {dimension_numbers = #tpu.dot_dimension_numbers<[1], [0], [0], [1], [0, 0, 1, 1], [], []>, precision = #tpu.contract_precision<fp32>} : vector<8x16xf32>, vector<16x32xf32>, vector<8x32xf32> -> vector<8x32xf32>
    %c0_3 = arith.constant 0 : index
    %c0_4 = arith.constant 0 : index
    %8 = vector.load %arg3[%c0_3, %c0_4] : memref<8x32xf32, #tpu.memory_space<vmem>>, vector<8x32xf32>
    tpu.vector_store %arg3[%c0_3, %c0_4], %7 {strides = array<i32>} : memref<8x32xf32, #tpu.memory_space<vmem>>, vector<8x32xf32>,
    return
  }
  func.func @transform_0(%arg0: i32) -> (i32, i32) {
    %c0_i32 = arith.constant 0 : i32
    %c0_i32_0 = arith.constant 0 : i32
    return %arg0, %c0_i32 : i32, i32
  }
  func.func @transform_1(%arg0: i32) -> (i32, i32) {
    %c0_i32 = arith.constant 0 : i32
    %c0_i32_0 = arith.constant 0 : i32
    %c0_i32_1 = arith.constant 0 : i32
    return %c0_i32, %c0_i32_0 : i32, i32
  }
  func.func @transform_2(%arg0: i32) -> (i32, i32) {
    %c0_i32 = arith.constant 0 : i32
    %c0_i32_0 = arith.constant 0 : i32
    return %arg0, %c0_i32 : i32, i32
  }
}

</mosaic_0001>

<bundles_post_ra>
// kernel: tpu_custom_call.1
= control target key start
LH: loop header
LB: loop body
LE: loop exit
PB: predicated region body
PF: predicated region fallthrough
CT: control target
= control target key end

     0   :  { %7 = vsyncpa [#allocation3], 0  ;;  %s1033_s0 = inlined_call_operand.vmem [shape: s32[16,1], index: 0, kind: input, shape index: {}]   ;;  %s1034_s1 = inlined_call_operand.vmem [shape: f32[16,32], index: 1, kind: input, shape index: {}]   ;;  %s1035_s2 = inlined_call_operand.hbm [shape: f32[16,32], index: 2, kind: output, shape index: {}]  }
   0x1   :  { %9 = vsyncpa [#allocation3 + $0x1], 0  ;;  %s917_s9 = smov 0   ;;  %s919_s10 = smov 0  }
   0x2   :  { %s921_s11 = smov 0   ;;  %s923_s12 = smov 0  }
   0x3 LB: > { %s938_s13 = sadd.s32 4294967295, %s895_s12   ;;  %s688_s14 = sadd.s32 4294967294, %s895_s12   ;;  %s895_s12 = sphi %s923_s12, %s1041_s12   ;;  %s891_s11 = sphi %s921_s11, %s1040_s11   ;;  %s887_s10 = sphi %s919_s10, %s1039_s10   ;;  %s883_s9 = sphi %s917_s9, %s1038_s9  }
   0x4   : > { %s942_s15 = sadd.s32 1, %s895_s12   ;;  %s69_s16 = sadd.s32 1, %s891_s11 }
   0x5   : > { %s66_s17 = ssub.s32 %s895_s12, %s942_s15  ;;  %p79_p0 = scmp.ne.s32.totalorder %s891_s11, %s887_s10 }
   0x6   : > { %p67_p1 = scmp.eq.s32.totalorder %s66_s17, 0  ;;  %p80_p2 = scmp.eq.s32.totalorder %s938_s13, 1 }
   0x7   : > { %p85_p3 = scmp.ne.s32.totalorder %s887_s10, %s883_s9  ;;  %p86_p4 = scmp.eq.s32.totalorder %s688_s14, 1 }
   0x8   : > { %s953_s18 = scalar_select %p67_p1, %s891_s11, %s69_s16  }
   0x9   : > { %p955_p5 = por %p80_p2, %p79_p0  ;;  %p959_p6 = por %p86_p4, %p85_p3 }
   0xa   : > { %p691_p7 = scmp.ge.s32.totalorder %s895_s12, 1  ;;  %p114_p8 = scmp.lt.s32.totalorder %s895_s12, 3 }
   0xc   : > { %p115_p9 = pnand %p691_p7, %p114_p8 }
   0xd   : > { %p135_p10 = scmp.lt.s32.totalorder (!%p115_p9), %s938_s13, 1  ;;  %v897_v0 = vmov (!%p115_p9), 0   ;;  %v148_v2 = vld [vmem:[%s1034_s1] sm:$0xff] (!%p115_p9)  ;;  %v149_v3 = vld [vmem:[%s1034_s1 + $0x8] sm:$0xff] (!%p115_p9)  ;;  %v898_v7 = vmov (!%p115_p9), 0.0|0.0   ;;  %vm899_vm0 = vmmov (!%p115_p9), 0   ;;  %v140_v20 = vlaneseq (!%p115_p9) }
   0xe   : > { %118 = sbr.rel (%p115_p9) target bundleno = 409 (0x199), region = 28  ;;  %832 = vset.pattern.permute.xlu0 (!%p115_p9), %v897_v0  ;;  %v155_v4 = vand.u32 (!%p115_p9), 4294901760, %v148_v2  ;;  %v158_v5 = vand.u32 (!%p115_p9), 4294901760, %v149_v3  ;;  %771 = vmatprep.subr.bf16.mxu0 (!%p115_p9), %v898_v7  ;;  %v900_v10 = vmov (!%p115_p9), 0.0   ;;  %vm150_vm1 = vcmask (!%p115_p9), 130048   ;;  %s132_s30 = sand.u32 (!%p115_p9), 1, %s887_s10  }
   0xf   : > { %762 = vmatprep.subr.bf16.mxu1 (!%p115_p9), %v898_v7  ;;  %745 = vmatprep.mubr.msk.f32.mxu0 (!%p115_p9), %vm899_vm0, %v900_v10  ;;  %v141_v21 = vand.u32 (!%p115_p9), 127, %v140_v20  ;;  %s692_s3 = sshll.u32 (!%p115_p9), %s132_s30, 3  ;;  %s699_s4 = sshll.u32 (!%p115_p9), %s938_s13, 7  ;;  %vm613_vm3 = vcmask (!%p115_p9), 261120  }
  0x10   : > { %v763_v6 = vpack.c.bf16 (!%p115_p9), %v158_v5, %v155_v4  ;;  %v233_v8 = vsub.f32 (!%p115_p9), %v148_v2, %v155_v4  ;;  %v240_v9 = vsub.f32 (!%p115_p9), %v149_v3, %v158_v5  ;;  %724 = vmatprep.mubr.msk.f32.mxu1 (!%p115_p9), %vm899_vm0, %v900_v10  ;;  %s134_s5 = scalar_lea.vmem (!%p115_p9), [#allocation2], %s692_s3  ;;  %s991_s14 = scalar_lea.hbm (!%p115_p9), %s1035_s2, %s699_s4 }
  0x11   : > { %s629_s6 = sshll.u32 (!%p115_p9), %s134_s5, 4  ;;  %s616_s16 = scalar_lea.sflag (!%p115_p9), [#allocation3], %s132_s30  ;;  %s993_s6 = int_to_ptr.vmem [resolvable:$true] %s629_s6 }
  0x12   : > { %773 = vmatpush3.bf16.msra.mxu0 (!%p115_p9), %v763_v6  ;;  %764 = vmatpush3.bf16.msra.mxu1 (!%p115_p9), %v763_v6  ;;  %v234_v11 = vand.u32 (!%p115_p9), 4294901760, %v233_v8  ;;  %v241_v12 = vand.u32 (!%p115_p9), 4294901760, %v240_v9  ;;  %v769_v19 = vpack.c.bf16 (!%p115_p9), %v240_v9, %v233_v8  ;;  %s833_s17 = scalar_lea.vmem (!%p115_p9), %s993_s6, 128 }
  0x13   : > { %765 = vmatprep.subr.bf16.mxu1 (!%p115_p9), %v898_v7  ;;  %774 = vmatprep.subr.bf16.mxu0 (!%p115_p9), %v898_v7  ;;  %p834_p11 = scmp.ne.s32.totalorder (!%p115_p9), %s993_s6, %s833_s17 }
  0x14   : > { %v235_v13 = vsub.f32 (!%p115_p9), %v233_v8, %v234_v11  ;;  %v242_v14 = vsub.f32 (!%p115_p9), %v240_v9, %v241_v12  ;;  %v775_v15 = vpack.c.bf16 (!%p115_p9), %v241_v12, %v234_v11 }
  0x15   : > { %s136_s21 = scalar_select %p135_p10, %s938_s13, 1 }
  0x16   : > { %v236_v16 = vand.u32 4294901760, %v235_v13  ;;  %v243_v17 = vand.u32 4294901760, %v242_v14  ;;  %p835_p12 = pnand %p834_p11, %p955_p5  ;;  %s901_s13 = smov [#allocation2]  }
  0x17   : > { %s693_s22 = sshll.u32 %s136_s21, 3  ;;  %s837_s21 = sshll.u32 %s901_s13, 4  ;;  %s838_s21 = int_to_ptr.vmem [resolvable:$false] %s837_s21 }
  0x18   : > { %s138_s25 = scalar_lea.vmem %s1033_s0, %s693_s22  ;;  %v766_v18 = vpack.c.bf16 %v243_v17, %v236_v16  ;;  %p836_p13 = pneg %p835_p12 }
  0x19   : > { %v139_v1 = vld [vmem:[%s138_s25] sm:$0xff]  ;;  %s839_s22 = scalar_lea.vmem %s838_s21, 256  ;;  %p840_p0 = scmp.lt.s32.totalorder %s993_s6, %s838_s21 }
  0x1a   : > { %143 = vperm.xlu0 %832, %v139_v1   ;;  %p841_p1 = scmp.lt.s32.totalorder %s839_s22, %s833_s17 }
  0x1c   : > { %p842_p2 = por %p841_p1, %p840_p0 }
  0x1e   : > { %p843_p3 = pnand %p842_p2, %p836_p13 }
  0x99   : > { %v144_v22 = vpop.permute.xlu0 %143 }
  0x9a   : > { %vm145_vm2 = vcmp.eq.s32.totalorder %v141_v21, %v144_v22 }
  0x9b   : > { %v694_v23 = vsel %vm145_vm2, 1.0, %v900_v10 }
  0x9c   : > { %v152_v24 = vsel %vm150_vm1, %v694_v23, 0 }
  0x9d   : > { %v222_v25 = vsub.f32 %v152_v24, %v152_v24 }
  0x9f   : > { %v223_v26 = vand.u32 4294901760, %v222_v25 }
  0xa1   : > { %746 = vmatmul.mubr.f32.vlgmr.msra.gmra.mrb[0].mxu0 %v223_v26  ;;  %v224_v27 = vsub.f32 %v222_v25, %v223_v26 }
  0xa2   : > { %776 = vmatpush3.bf16.msra.mxu0 %v775_v15  ;;  %752 = vmatprep.mubr.msk.f32.mxu0 %vm899_vm0, %v900_v10 }
  0xa3   : > { %v225_v28 = vand.u32 4294901760, %v224_v27  ;;  %777 = vmatprep.subr.bf16.mxu0 %v898_v7 }
  0xa5   : > { %725 = vmatmul.mubr.f32.vlgmr.msra.gmra.mrb[0].mxu1 %v225_v28 }
  0xa6   : > { %767 = vmatpush3.bf16.msra.mxu1 %v766_v18  ;;  %731 = vmatprep.mubr.msk.f32.mxu1 %vm899_vm0, %v900_v10 }
  0xa7   : > { %768 = vmatprep.subr.bf16.mxu1 %v898_v7 }
  0xa9   : > { %753 = vmatmul.mubr.msk.f32.vlgmr.msra.gmra.mrb[0].mxu0 %vm150_vm1, %v694_v23 }
  0xaa   : > { %779 = vmatpush3.bf16.msra.mxu0 %v763_v6  ;;  %759 = vmatprep.mubr.msk.f32.mxu0 %vm899_vm0, %v900_v10 }
  0xad   : > { %732 = vmatmul.mubr.msk.f32.vlgmr.msra.gmra.mrb[0].mxu1 %vm150_vm1, %v694_v23 }
  0xae   : > { %770 = vmatpush3.bf16.msra.mxu1 %v769_v19  ;;  %738 = vmatprep.mubr.msk.f32.mxu1 %vm899_vm0, %v900_v10 }
  0xb1   : > { %760 = vmatmul.mubr.msk.f32.vlgmr.msra.gmra.mrb[0].mxu0 %vm150_vm1, %v694_v23 }
  0xb5   : > { %739 = vmatmul.mubr.f32.vlgmr.msra.gmra.mrb[0].mxu1 %v222_v25 }
 0x184   : > { %v609_v29 = vpop.f32.mrb[0].mxu0 }
 0x185   : > { %v761_v30 = vpop.f32.mrb[1].mxu0 }
 0x188   : > { %v384_v31 = vpop.f32.mrb[0].mxu1 }
 0x189   : > { %v780_v32 = vadd.f32 %v609_v29, %v384_v31  ;;  %v740_v33 = vpop.f32.mrb[1].mxu1 }
 0x18b   : > { %614 = vst.msk [vmem:[%s134_s5] sm:$0xff] %vm613_vm3, %v780_v32 }
 0x18c   : > { %846 = shalt.err (!%p843_p3)
}
 0x18d   : > { %s847_s23 = scalar_lea.hbm %s991_s14, 128  ;;  %s851_s26 = scalar_lea.hbm %s1035_s2, 256 }
 0x18e   : > { %p848_p4 = scmp.ne.s32.totalorder %s991_s14, %s847_s23  ;;  %p852_p9 = scmp.lt.u32.totalorder %s991_s14, %s1035_s2 }
 0x18f   : > { %p853_p10 = scmp.lt.u32.totalorder %s851_s26, %s847_s23  ;;  %p855_p12 = scmp.lt.u32.totalorder %s847_s23, %s991_s14 }
 0x190   : > { %p849_p7 = pnand %p848_p4, %p955_p5 }
 0x191   : > { %p854_p11 = por %p853_p10, %p852_p9 }
 0x192   : > { %p850_p8 = pneg %p849_p7 }
 0x193   : > { %p856_p13 = por %p855_p12, %p854_p11 }
 0x195   : > { %p857_p0 = pnand %p856_p13, %p850_p8 }
 0x197   : > { %860 = shalt.err (!%p857_p0)
}
 0x198   : > { %789 = dma.vmem_to_hbm [thread:$0]  (%p955_p5), %s993_s6, 128, %s991_s14, %s616_s16  }
 0x199 PF: > { %p795_p1 = scmp.ge.s32.totalorder %s895_s12, 2  ;;  %s641_s29 = sand.u32 1, %s883_s9  }
 0x19a   : > { %s642_s30 = scalar_lea.sflag [#allocation3], %s641_s29 }
 0x19b   : > { %p792_p2 = pnand %p795_p1, %p959_p6 }
 0x19d   : > { %878 = dma.done.wait (!%p792_p2), %s642_s30, 128  }
 0x19e   : > { %880 = vsyncadd (!%p792_p2), %s642_s30, 4294967168  ;;  %p12_p3 = scmp.ge.s32.totalorder %s942_s15, 4   ;;  %s1038_s9 = smov %s887_s10 }
 0x19f   : > { %s1039_s10 = smov %s891_s11  ;;  %s1040_s11 = smov %s953_s18 }
 0x1a0   : > { %s1041_s12 = smov %s942_s15  ;;  %14 = sbr.rel (!%p12_p3) target bundleno = 3 (0x3), region = 63 }
 0x1a7   :  { %647 = vsyncpa [#allocation3], 1 }
 0x1a8   :  { %649 = vsyncpa [#allocation3 + $0x1], 1 }

// kernel: tpu_custom_call.1
= control target key start
LH: loop header
LB: loop body
LE: loop exit
PB: predicated region body
PF: predicated region fallthrough
CT: control target
= control target key end

     0   :  { %7 = vsyncpa [#allocation3], 0  ;;  %s1033_s0 = inlined_call_operand.vmem [shape: s32[16,1], index: 0, kind: input, shape index: {}]   ;;  %s1034_s1 = inlined_call_operand.vmem [shape: f32[16,32], index: 1, kind: input, shape index: {}]   ;;  %s1035_s2 = inlined_call_operand.hbm [shape: f32[16,32], index: 2, kind: output, shape index: {}]  }
   0x1   :  { %9 = vsyncpa [#allocation3 + $0x1], 0  ;;  %s917_s9 = smov 0   ;;  %s919_s10 = smov 0  }
   0x2   :  { %s921_s11 = smov 0   ;;  %s923_s12 = smov 0  }
   0x3 LB: > { %s938_s13 = sadd.s32 4294967295, %s895_s12   ;;  %s688_s14 = sadd.s32 4294967294, %s895_s12   ;;  %s895_s12 = sphi %s923_s12, %s1041_s12   ;;  %s891_s11 = sphi %s921_s11, %s1040_s11   ;;  %s887_s10 = sphi %s919_s10, %s1039_s10   ;;  %s883_s9 = sphi %s917_s9, %s1038_s9  }
   0x4   : > { %s942_s15 = sadd.s32 1, %s895_s12   ;;  %s69_s16 = sadd.s32 1, %s891_s11 }
   0x5   : > { %s66_s17 = ssub.s32 %s895_s12, %s942_s15  ;;  %p79_p0 = scmp.ne.s32.totalorder %s891_s11, %s887_s10 }
   0x6   : > { %p67_p1 = scmp.eq.s32.totalorder %s66_s17, 0  ;;  %p80_p2 = scmp.eq.s32.totalorder %s938_s13, 1 }
   0x7   : > { %p85_p3 = scmp.ne.s32.totalorder %s887_s10, %s883_s9  ;;  %p86_p4 = scmp.eq.s32.totalorder %s688_s14, 1 }
   0x8   : > { %s953_s18 = scalar_select %p67_p1, %s891_s11, %s69_s16  }
   0x9   : > { %p955_p5 = por %p80_p2, %p79_p0  ;;  %p959_p6 = por %p86_p4, %p85_p3 }
   0xa   : > { %p691_p7 = scmp.ge.s32.totalorder %s895_s12, 1  ;;  %p114_p8 = scmp.lt.s32.totalorder %s895_s12, 3 }
   0xc   : > { %p115_p9 = pnand %p691_p7, %p114_p8 }
   0xd   : > { %p135_p10 = scmp.lt.s32.totalorder (!%p115_p9), %s938_s13, 1  ;;  %v897_v0 = vmov (!%p115_p9), 0   ;;  %v148_v2 = vld [vmem:[%s1034_s1] sm:$0xff] (!%p115_p9)  ;;  %v149_v3 = vld [vmem:[%s1034_s1 + $0x8] sm:$0xff] (!%p115_p9)  ;;  %v898_v7 = vmov (!%p115_p9), 0.0|0.0   ;;  %vm899_vm0 = vmmov (!%p115_p9), 0   ;;  %v140_v20 = vlaneseq (!%p115_p9) }
   0xe   : > { %118 = sbr.rel (%p115_p9) target bundleno = 409 (0x199), region = 28  ;;  %832 = vset.pattern.permute.xlu0 (!%p115_p9), %v897_v0  ;;  %v155_v4 = vand.u32 (!%p115_p9), 4294901760, %v148_v2  ;;  %v158_v5 = vand.u32 (!%p115_p9), 4294901760, %v149_v3  ;;  %771 = vmatprep.subr.bf16.mxu0 (!%p115_p9), %v898_v7  ;;  %v900_v10 = vmov (!%p115_p9), 0.0   ;;  %vm150_vm1 = vcmask (!%p115_p9), 130048   ;;  %s132_s30 = sand.u32 (!%p115_p9), 1, %s887_s10  }
   0xf   : > { %762 = vmatprep.subr.bf16.mxu1 (!%p115_p9), %v898_v7  ;;  %745 = vmatprep.mubr.msk.f32.mxu0 (!%p115_p9), %vm899_vm0, %v900_v10  ;;  %v141_v21 = vand.u32 (!%p115_p9), 127, %v140_v20  ;;  %s692_s3 = sshll.u32 (!%p115_p9), %s132_s30, 3  ;;  %s699_s4 = sshll.u32 (!%p115_p9), %s938_s13, 7  ;;  %vm613_vm3 = vcmask (!%p115_p9), 261120  }
  0x10   : > { %v763_v6 = vpack.c.bf16 (!%p115_p9), %v158_v5, %v155_v4  ;;  %v233_v8 = vsub.f32 (!%p115_p9), %v148_v2, %v155_v4  ;;  %v240_v9 = vsub.f32 (!%p115_p9), %v149_v3, %v158_v5  ;;  %724 = vmatprep.mubr.msk.f32.mxu1 (!%p115_p9), %vm899_vm0, %v900_v10  ;;  %s134_s5 = scalar_lea.vmem (!%p115_p9), [#allocation2], %s692_s3  ;;  %s991_s14 = scalar_lea.hbm (!%p115_p9), %s1035_s2, %s699_s4 }
  0x11   : > { %s629_s6 = sshll.u32 (!%p115_p9), %s134_s5, 4  ;;  %s616_s16 = scalar_lea.sflag (!%p115_p9), [#allocation3], %s132_s30  ;;  %s993_s6 = int_to_ptr.vmem [resolvable:$true] %s629_s6 }
  0x12   : > { %773 = vmatpush3.bf16.msra.mxu0 (!%p115_p9), %v763_v6  ;;  %764 = vmatpush3.bf16.msra.mxu1 (!%p115_p9), %v763_v6  ;;  %v234_v11 = vand.u32 (!%p115_p9), 4294901760, %v233_v8  ;;  %v241_v12 = vand.u32 (!%p115_p9), 4294901760, %v240_v9  ;;  %v769_v19 = vpack.c.bf16 (!%p115_p9), %v240_v9, %v233_v8  ;;  %s833_s17 = scalar_lea.vmem (!%p115_p9), %s993_s6, 128 }
  0x13   : > { %765 = vmatprep.subr.bf16.mxu1 (!%p115_p9), %v898_v7  ;;  %774 = vmatprep.subr.bf16.mxu0 (!%p115_p9), %v898_v7  ;;  %p834_p11 = scmp.ne.s32.totalorder (!%p115_p9), %s993_s6, %s833_s17 }
  0x14   : > { %v235_v13 = vsub.f32 (!%p115_p9), %v233_v8, %v234_v11  ;;  %v242_v14 = vsub.f32 (!%p115_p9), %v240_v9, %v241_v12  ;;  %v775_v15 = vpack.c.bf16 (!%p115_p9), %v241_v12, %v234_v11 }
  0x15   : > { %s136_s21 = scalar_select %p135_p10, %s938_s13, 1 }
  0x16   : > { %v236_v16 = vand.u32 4294901760, %v235_v13  ;;  %v243_v17 = vand.u32 4294901760, %v242_v14  ;;  %p835_p12 = pnand %p834_p11, %p955_p5  ;;  %s901_s13 = smov [#allocation2]  }
  0x17   : > { %s693_s22 = sshll.u32 %s136_s21, 3  ;;  %s837_s21 = sshll.u32 %s901_s13, 4  ;;  %s838_s21 = int_to_ptr.vmem [resolvable:$false] %s837_s21 }
  0x18   : > { %s138_s25 = scalar_lea.vmem %s1033_s0, %s693_s22  ;;  %v766_v18 = vpack.c.bf16 %v243_v17, %v236_v16  ;;  %p836_p13 = pneg %p835_p12 }
  0x19   : > { %v139_v1 = vld [vmem:[%s138_s25] sm:$0xff]  ;;  %s839_s22 = scalar_lea.vmem %s838_s21, 256  ;;  %p840_p0 = scmp.lt.s32.totalorder %s993_s6, %s838_s21 }
  0x1a   : > { %143 = vperm.xlu0 %832, %v139_v1   ;;  %p841_p1 = scmp.lt.s32.totalorder %s839_s22, %s833_s17 }
  0x1c   : > { %p842_p2 = por %p841_p1, %p840_p0 }
  0x1e   : > { %p843_p3 = pnand %p842_p2, %p836_p13 }
  0x99   : > { %v144_v22 = vpop.permute.xlu0 %143 }
  0x9a   : > { %vm145_vm2 = vcmp.eq.s32.totalorder %v141_v21, %v144_v22 }
  0x9b   : > { %v694_v23 = vsel %vm145_vm2, 1.0, %v900_v10 }
  0x9c   : > { %v152_v24 = vsel %vm150_vm1, %v694_v23, 0 }
  0x9d   : > { %v222_v25 = vsub.f32 %v152_v24, %v152_v24 }
  0x9f   : > { %v223_v26 = vand.u32 4294901760, %v222_v25 }
  0xa1   : > { %746 = vmatmul.mubr.f32.vlgmr.msra.gmra.mrb[0].mxu0 %v223_v26  ;;  %v224_v27 = vsub.f32 %v222_v25, %v223_v26 }
  0xa2   : > { %776 = vmatpush3.bf16.msra.mxu0 %v775_v15  ;;  %752 = vmatprep.mubr.msk.f32.mxu0 %vm899_vm0, %v900_v10 }
  0xa3   : > { %v225_v28 = vand.u32 4294901760, %v224_v27  ;;  %777 = vmatprep.subr.bf16.mxu0 %v898_v7 }
  0xa5   : > { %725 = vmatmul.mubr.f32.vlgmr.msra.gmra.mrb[0].mxu1 %v225_v28 }
  0xa6   : > { %767 = vmatpush3.bf16.msra.mxu1 %v766_v18  ;;  %731 = vmatprep.mubr.msk.f32.mxu1 %vm899_vm0, %v900_v10 }
  0xa7   : > { %768 = vmatprep.subr.bf16.mxu1 %v898_v7 }
  0xa9   : > { %753 = vmatmul.mubr.msk.f32.vlgmr.msra.gmra.mrb[0].mxu0 %vm150_vm1, %v694_v23 }
  0xaa   : > { %779 = vmatpush3.bf16.msra.mxu0 %v763_v6  ;;  %759 = vmatprep.mubr.msk.f32.mxu0 %vm899_vm0, %v900_v10 }
  0xad   : > { %732 = vmatmul.mubr.msk.f32.vlgmr.msra.gmra.mrb[0].mxu1 %vm150_vm1, %v694_v23 }
  0xae   : > { %770 = vmatpush3.bf16.msra.mxu1 %v769_v19  ;;  %738 = vmatprep.mubr.msk.f32.mxu1 %vm899_vm0, %v900_v10 }
  0xb1   : > { %760 = vmatmul.mubr.msk.f32.vlgmr.msra.gmra.mrb[0].mxu0 %vm150_vm1, %v694_v23 }
  0xb5   : > { %739 = vmatmul.mubr.f32.vlgmr.msra.gmra.mrb[0].mxu1 %v222_v25 }
 0x184   : > { %v609_v29 = vpop.f32.mrb[0].mxu0 }
 0x185   : > { %v761_v30 = vpop.f32.mrb[1].mxu0 }
 0x188   : > { %v384_v31 = vpop.f32.mrb[0].mxu1 }
 0x189   : > { %v780_v32 = vadd.f32 %v609_v29, %v384_v31  ;;  %v740_v33 = vpop.f32.mrb[1].mxu1 }
 0x18b   : > { %614 = vst.msk [vmem:[%s134_s5] sm:$0xff] %vm613_vm3, %v780_v32 }
 0x18c   : > { %846 = shalt.err (!%p843_p3)
}
 0x18d   : > { %s847_s23 = scalar_lea.hbm %s991_s14, 128  ;;  %s851_s26 = scalar_lea.hbm %s1035_s2, 256 }
 0x18e   : > { %p848_p4 = scmp.ne.s32.totalorder %s991_s14, %s847_s23  ;;  %p852_p9 = scmp.lt.u32.totalorder %s991_s14, %s1035_s2 }
 0x18f   : > { %p853_p10 = scmp.lt.u32.totalorder %s851_s26, %s847_s23  ;;  %p855_p12 = scmp.lt.u32.totalorder %s847_s23, %s991_s14 }
 0x190   : > { %p849_p7 = pnand %p848_p4, %p955_p5 }
 0x191   : > { %p854_p11 = por %p853_p10, %p852_p9 }
 0x192   : > { %p850_p8 = pneg %p849_p7 }
 0x193   : > { %p856_p13 = por %p855_p12, %p854_p11 }
 0x195   : > { %p857_p0 = pnand %p856_p13, %p850_p8 }
 0x197   : > { %860 = shalt.err (!%p857_p0)
}
 0x198   : > { %789 = dma.vmem_to_hbm [thread:$0]  (%p955_p5), %s993_s6, 128, %s991_s14, %s616_s16  }
 0x199 PF: > { %p795_p1 = scmp.ge.s32.totalorder %s895_s12, 2  ;;  %s641_s29 = sand.u32 1, %s883_s9  }
 0x19a   : > { %s642_s30 = scalar_lea.sflag [#allocation3], %s641_s29 }
 0x19b   : > { %p792_p2 = pnand %p795_p1, %p959_p6 }
 0x19d   : > { %878 = dma.done.wait (!%p792_p2), %s642_s30, 128  }
 0x19e   : > { %880 = vsyncadd (!%p792_p2), %s642_s30, 4294967168  ;;  %p12_p3 = scmp.ge.s32.totalorder %s942_s15, 4   ;;  %s1038_s9 = smov %s887_s10 }
 0x19f   : > { %s1039_s10 = smov %s891_s11  ;;  %s1040_s11 = smov %s953_s18 }
 0x1a0   : > { %s1041_s12 = smov %s942_s15  ;;  %14 = sbr.rel (!%p12_p3) target bundleno = 3 (0x3), region = 63 }
 0x1a7   :  { %647 = vsyncpa [#allocation3], 1 }
 0x1a8   :  { %649 = vsyncpa [#allocation3 + $0x1], 1 }

</bundles_post_ra>
